<compile_context>
chip_gen: v7x
topology: tpu7x:2x2x1
jax: 0.10.0
libtpu: 0.0.40
codegen_flags: <defaults>
</compile_context>

<pallas_src>
import math

import numpy as np
import jax
import jax.numpy as jnp
from jax.experimental import pallas as pl
from jax.experimental.pallas import tpu as pltpu

_HALF_LOG_2PI = 0.5 * math.log(2.0 * math.pi)

_VMEM_LIMIT = 32 * 1024 * 1024        # scoped-VMEM request; safe on v5e/v6e/v7x
_VMEM_TILE_BUDGET = 24 * 1024 * 1024  # double-buffered working-set budget for tile sizing
_MAX_BLOCK_B = 8192                   # default upper bound on the batch tile
_SMALL_BATCH = 256                    # below this: single block, no host padding needed


def _round_up(n, m):
    return ((n + m - 1) // m) * m


def _tiling(batch, inp_dim, out_dim, max_block_b):
    """Pick (batch_tile, num_tiles). No host-side padding is used:
    grid = cdiv(batch, tile) and the ragged last block relies on Pallas'
    masked boundary behaviour (per-row math only, so this is safe)."""
    if batch <= _SMALL_BATCH:
        # Single block: block_shape == full array dims is always layout-legal.
        return batch, 1
    assert max_block_b % 128 == 0, "max_block_b must be a multiple of 128"
    # Per-row f32 bytes for x + actions + mean + lp, double-buffered.
    per_row = 4 * (inp_dim + out_dim + out_dim + 1) * 2
    tb_vmem = max(128, (_VMEM_TILE_BUDGET // per_row) // 128 * 128)
    # Keep >= 2 grid steps so the 'parallel' axis can feed both v7x TensorCores.
    tb_split = _round_up(pl.cdiv(batch, 2), 128)
    tb = min(max_block_b, tb_vmem, tb_split)
    return tb, pl.cdiv(batch, tb)


# ----------------------------- Pallas kernels -----------------------------

def _mean_kernel(x_ref, wt_ref, b_ref, mean_ref):
    # mean = x @ W^T + b   (MXU matmul, f32 accumulate)
    mean_ref[...] = (
        jnp.dot(x_ref[...], wt_ref[...], preferred_element_type=jnp.float32)
        + b_ref[...]
    ).astype(mean_ref.dtype)


def _make_fused_kernel(inv_std, lp_const):
    """Fused linear + diag-Gaussian log-prob kernel, also emitting mean.

    `mean` is produced in VMEM, written out once, and immediately consumed for
    z = (a - mean) * inv_std.  The per-row log-prob is stored lane-dense as a
    (1, TB) row (batch on the lane axis)."""
    inv_std = float(inv_std)
    lp_const = float(lp_const)

    def kernel(x_ref, wt_ref, b_ref, act_ref, mean_ref, lp_ref):
        mean = (
            jnp.dot(x_ref[...], wt_ref[...], preferred_element_type=jnp.float32)
            + b_ref[...]
        )                                                    # (TB, O) f32
        mean_ref[...] = mean.astype(mean_ref.dtype)
        z = (act_ref[...] - mean) * inv_std                  # (TB, O)
        # keepdims + explicit 2-D transpose for a robust sublane->lane move.
        lp_col = -0.5 * jnp.sum(z * z, axis=-1, keepdims=True) + lp_const  # (TB, 1)
        lp_ref[...] = jnp.transpose(lp_col)                  # (1, TB) lane-dense store

    return kernel


# ----------------------------- pallas_call wrappers -----------------------------

def pallas_mean(x, w_t, bias, *, max_block_b=_MAX_BLOCK_B):
    """mean = x @ w_t + bias ; x:(B,I), w_t:(I,O), bias:(1,O) -> (B,O)."""
    batch, inp_dim = x.shape
    out_dim = w_t.shape[1]
    tb, nb = _tiling(batch, inp_dim, out_dim, max_block_b)
    return pl.pallas_call(
        _mean_kernel,
        out_shape=jax.ShapeDtypeStruct((batch, out_dim), jnp.float32),
        grid=(nb,),
        in_specs=[
            pl.BlockSpec((tb, inp_dim), lambda i: (i, 0)),
            pl.BlockSpec((inp_dim, out_dim), lambda i: (0, 0)),
            pl.BlockSpec((1, out_dim), lambda i: (0, 0)),
        ],
        out_specs=pl.BlockSpec((tb, out_dim), lambda i: (i, 0)),
        compiler_params=pltpu.CompilerParams(
            dimension_semantics=("parallel",),
            vmem_limit_bytes=_VMEM_LIMIT,
        ),
    )(x, w_t, bias)


def pallas_mean_and_log_probs(x, w_t, bias, actions, inv_std, lp_const,
                              *, max_block_b=_MAX_BLOCK_B):
    """Fused x@W^T+b -> (mean, Normal.log_prob(actions).sum(-1))."""
    batch, inp_dim = x.shape
    out_dim = w_t.shape[1]
    tb, nb = _tiling(batch, inp_dim, out_dim, max_block_b)
    mean, lp = pl.pallas_call(
        _make_fused_kernel(inv_std, lp_const),
        out_shape=(
            jax.ShapeDtypeStruct((batch, out_dim), jnp.float32),
            jax.ShapeDtypeStruct((1, batch), jnp.float32),
        ),
        grid=(nb,),
        in_specs=[
            pl.BlockSpec((tb, inp_dim), lambda i: (i, 0)),
            pl.BlockSpec((inp_dim, out_dim), lambda i: (0, 0)),
            pl.BlockSpec((1, out_dim), lambda i: (0, 0)),
            pl.BlockSpec((tb, out_dim), lambda i: (i, 0)),
        ],
        out_specs=(
            pl.BlockSpec((tb, out_dim), lambda i: (i, 0)),
            pl.BlockSpec((1, tb), lambda i: (0, i)),
        ),
        compiler_params=pltpu.CompilerParams(
            dimension_semantics=("parallel",),
            vmem_limit_bytes=_VMEM_LIMIT,
        ),
    )(x, w_t, bias, actions)
    return mean, lp[0]


# ----------------------------- distribution / module wrappers -----------------------------

class FixedNormalPallas:
    """JAX analogue of FixedNormal (diag Gaussian, fixed uniform std).

    log_probs() runs the fused kernel which also emits (and caches) mean, so a
    subsequent mode() is free; mode() alone uses the small standalone matmul
    kernel.  entropy() is a closed-form constant."""

    def __init__(self, x, w_t, bias, std, max_block_b=_MAX_BLOCK_B):
        self._x = x
        self._w_t = w_t
        self._bias = bias
        self._std = float(std)
        self._max_block_b = max_block_b
        out_dim = w_t.shape[1]
        self._inv_std = 1.0 / self._std
        self._lp_const = out_dim * (-math.log(self._std) - _HALF_LOG_2PI)
        self._ent_const = out_dim * (0.5 + _HALF_LOG_2PI + math.log(self._std))
        self._mean = None

    @property
    def mean(self):
        if self._mean is None:
            self._mean = pallas_mean(self._x, self._w_t, self._bias,
                                     max_block_b=self._max_block_b)
        return self._mean

    def mode(self):
        return self.mean

    def log_probs(self, actions):
        mean, lp = pallas_mean_and_log_probs(
            self._x, self._w_t, self._bias, actions,
            self._inv_std, self._lp_const, max_block_b=self._max_block_b)
        if self._mean is None:
            self._mean = mean
        return lp

    def entropy(self):
        # Entropy of N(mean, std) does not depend on mean -> constant per row.
        batch = self._x.shape[0]
        return jnp.full((batch,), self._ent_const, dtype=jnp.float32)

    # TODO(synk): .sample()/.rsample() of torch.distributions.Normal not implemented
    # (not exercised by the module; would be plain jax.random, not a Pallas kernel).


class DiagGaussianPallas:
    """DiagGaussian: orthogonal-init Linear -> FixedNormal(mean, std)."""

    def __init__(self, inp_dim, out_dim, std=0.5, seed=0, max_block_b=_MAX_BLOCK_B):
        # deterministic orthogonal init (gain=1) like nn.init.orthogonal_
        rng = np.random.default_rng(seed)
        a = rng.standard_normal((inp_dim, out_dim)).astype(np.float32)
        q, r = np.linalg.qr(a)                    # orthonormal columns
        d = np.sign(np.diag(r))
        d[d == 0.0] = 1.0
        q = q * d[None, :]
        self.w_t = jnp.asarray(q, dtype=jnp.float32)         # (inp_dim, out_dim) = W^T
        self.b = jnp.zeros((1, out_dim), dtype=jnp.float32)  # constant_(0)
        self.std = float(std)
        self.max_block_b = max_block_b

    def __call__(self, x):
        return FixedNormalPallas(x, self.w_t, self.b, self.std,
                                 max_block_b=self.max_block_b)


# ----------------------------- main -----------------------------

def _reference(x, w_t, bias, actions, std):
    mean = x @ w_t + bias
    lp = (-0.5 * ((actions - mean) / std) ** 2
          - jnp.log(std) - _HALF_LOG_2PI).sum(-1)
    ent = jnp.broadcast_to(0.5 + _HALF_LOG_2PI + jnp.log(std), mean.shape).sum(-1)
    return mean, lp, ent


def _run_check(batch, inp_dim, out_dim, max_block_b, key, mode_first):
    kx, ka = jax.random.split(key)
    x = jax.random.normal(kx, (batch, inp_dim), dtype=jnp.float32)
    actions = jax.random.normal(ka, (batch, out_dim), dtype=jnp.float32)

    model = DiagGaussianPallas(inp_dim, out_dim, std=0.5, seed=0,
                               max_block_b=max_block_b)
    dist = model(x)
    if mode_first:
        mode = dist.mode()                 # standalone mean kernel
        lp = dist.log_probs(actions)       # fused kernel
    else:
        lp = dist.log_probs(actions)       # fused kernel (also caches mean)
        mode = dist.mode()                 # served from cache
    ent = dist.entropy()
    jax.block_until_ready((mode, lp, ent))

    mean_ref, lp_ref, ent_ref = _reference(x, model.w_t, model.b, actions, 0.5)
    np.testing.assert_allclose(np.asarray(mode), np.asarray(mean_ref), rtol=1e-5, atol=1e-5)
    np.testing.assert_allclose(np.asarray(lp), np.asarray(lp_ref), rtol=1e-5, atol=1e-5)
    np.testing.assert_allclose(np.asarray(ent), np.asarray(ent_ref), rtol=1e-5, atol=1e-5)


if __name__ == "__main__":
    key = jax.random.PRNGKey(0)
    k1, k2 = jax.random.split(key)

    # Small case: batch=6 -> single block, no padding anywhere.
    _run_check(batch=6, inp_dim=32, out_dim=8, max_block_b=_MAX_BLOCK_B,
               key=k1, mode_first=True)

    # Multi-block ragged case: batch=300 with forced 128-row tiles -> grid=(3,)
    # with a 44-row last block handled by masked boundary reads/stores
    # (exercises the padding-free tiled path and the fused mean+lp outputs).
    _run_check(batch=300, inp_dim=32, out_dim=8, max_block_b=128,
               key=k2, mode_first=False)

    print("KERNEL_OK")
</pallas_src>

<mosaic_0001>
module attributes {stable_mosaic.version = 11 : i64} {
  func.func @_mean_kernel(%arg0: i32, %arg1: memref<6x32xf32, #tpu.memory_space<vmem>>, %arg2: memref<32x8xf32, #tpu.memory_space<vmem>>, %arg3: memref<1x8xf32, #tpu.memory_space<vmem>>, %arg4: memref<6x8xf32, #tpu.memory_space<vmem>>) attributes {dimension_semantics = [#tpu.dimension_semantics<parallel>], iteration_bounds = array<i64: 1>, scalar_prefetch = 0 : i64, scratch_operands = 0 : i64, tpu.core_type = #tpu.core_type<tc>, window_params = [{transform_indices = @transform_0, window_bounds = array<i64: 6, 32>}, {pipeline_mode = #tpu.pipeline_mode<synchronous>, transform_indices = @transform_1, window_bounds = array<i64: 32, 8>}, {pipeline_mode = #tpu.pipeline_mode<synchronous>, transform_indices = @transform_2, window_bounds = array<i64: 1, 8>}, {transform_indices = @transform_3, window_bounds = array<i64: 6, 8>}]} {
    %c0 = arith.constant 0 : index
    %c0_0 = arith.constant 0 : index
    %0 = vector.load %arg1[%c0, %c0_0] : memref<6x32xf32, #tpu.memory_space<vmem>>, vector<6x32xf32>
    %c0_1 = arith.constant 0 : index
    %c0_2 = arith.constant 0 : index
    %1 = vector.load %arg2[%c0_1, %c0_2] : memref<32x8xf32, #tpu.memory_space<vmem>>, vector<32x8xf32>
    %cst = arith.constant dense<0.000000e+00> : vector<6x8xf32>
    %2 = tpu.matmul %0, %1, %cst {dimension_numbers = #tpu.dot_dimension_numbers<[1], [0], [0], [1], [0, 0, 1, 1], [], []>} : vector<6x32xf32>, vector<32x8xf32>, vector<6x8xf32> -> vector<6x8xf32>
    %c0_3 = arith.constant 0 : index
    %c0_4 = arith.constant 0 : index
    %3 = vector.load %arg3[%c0_3, %c0_4] : memref<1x8xf32, #tpu.memory_space<vmem>>, vector<1x8xf32>
    %4 = vector.broadcast %3 : vector<1x8xf32> to vector<6x8xf32>
    %5 = arith.addf %2, %4 : vector<6x8xf32>
    %c0_5 = arith.constant 0 : index
    %c0_6 = arith.constant 0 : index
    %6 = vector.load %arg4[%c0_5, %c0_6] : memref<6x8xf32, #tpu.memory_space<vmem>>, vector<6x8xf32>
    tpu.vector_store %arg4[%c0_5, %c0_6], %5 {strides = array<i32>} : memref<6x8xf32, #tpu.memory_space<vmem>>, vector<6x8xf32>,
    return
  }
  func.func @transform_0(%arg0: i32) -> (i32, i32) {
    %c0_i32 = arith.constant 0 : i32
    %c0_i32_0 = arith.constant 0 : i32
    return %arg0, %c0_i32 : i32, i32
  }
  func.func @transform_1(%arg0: i32) -> (i32, i32) {
    %c0_i32 = arith.constant 0 : i32
    %c0_i32_0 = arith.constant 0 : i32
    %c0_i32_1 = arith.constant 0 : i32
    return %c0_i32, %c0_i32_0 : i32, i32
  }
  func.func @transform_2(%arg0: i32) -> (i32, i32) {
    %c0_i32 = arith.constant 0 : i32
    %c0_i32_0 = arith.constant 0 : i32
    %c0_i32_1 = arith.constant 0 : i32
    return %c0_i32, %c0_i32_0 : i32, i32
  }
  func.func @transform_3(%arg0: i32) -> (i32, i32) {
    %c0_i32 = arith.constant 0 : i32
    %c0_i32_0 = arith.constant 0 : i32
    return %arg0, %c0_i32 : i32, i32
  }
}

</mosaic_0001>

<bundles_post_ra>
// kernel: tpu_custom_call.1
= control target key start
LH: loop header
LB: loop body
LE: loop exit
PB: predicated region body
PF: predicated region fallthrough
CT: control target
= control target key end

     0   :  { %v169_v3 = vmov 0.0|0.0   ;;  %vm170_vm0 = vmmov 0   ;;  %v171_v6 = vmov 0.0   ;;  %s223_s0 = inlined_call_operand.vmem [shape: f32[6,32], index: 0, kind: input, shape index: {}]   ;;  %s224_s1 = inlined_call_operand.vmem [shape: f32[32,8], index: 1, kind: input, shape index: {}]   ;;  %s225_s2 = inlined_call_operand.vmem [shape: f32[1,8], index: 2, kind: input, shape index: {}]   ;;  %s226_s3 = inlined_call_operand.hbm [shape: f32[6,8], index: 3, kind: output, shape index: {}]  }
   0x1   :  { %v16_v0 = vld [vmem:[%s224_s1] sm:$0xff]  ;;  %v17_v1 = vld [vmem:[%s224_s1 + $0x8] sm:$0xff]  ;;  %v18_v2 = vld [vmem:[%s224_s1 + $0x10] sm:$0xff]  ;;  %135 = vmatprep.subr.bf16.mxu0 %v169_v3  ;;  %132 = vmatprep.mubr.msk.f32.mxu0 %vm170_vm0, %v171_v6 }
   0x2   :  { %v136_v4 = vpack.c.bf16 %v17_v1, %v16_v0  ;;  %v19_v5 = vld [vmem:[%s224_s1 + $0x18] sm:$0xff] }
   0x3   :  { %8 = vsyncpa [#allocation3], 0  ;;  %v139_v7 = vpack.c.bf16 %v19_v5, %v18_v2  ;;  %v15_v8 = vld [vmem:[%s223_s0] sm:$0x3f]  ;;  %vm27_vm1 = vcmask 261120   ;;  %s172_s24 = smov [#allocation2]  }
   0x4   :  { %137 = vmatpush3.bf16.msra.mxu0 %v136_v4  ;;  %v117_v9 = vld [vmem:[%s225_s2] ss:$0 sm:$0xff]  ;;  %s109_s1 = sshll.u32 %s172_s24, 4  ;;  %vm101_vm2 = vcmask 62464   ;;  %s110_s1 = int_to_ptr.vmem [resolvable:$true] %s109_s1 }
   0x5   :  { %138 = vmatprep.subr.bf16.mxu0 %v169_v3  ;;  %s145_s25 = scalar_lea.vmem %s110_s1, 128  ;;  %p150_p1 = scmp.lt.s32.totalorder %s110_s1, %s110_s1 }
   0x6   :  { %p146_p0 = scmp.ne.s32.totalorder %s110_s1, %s145_s25  ;;  %p151_p2 = scmp.lt.s32.totalorder %s145_s25, %s145_s25 }
   0x8   :  { %140 = vmatpush3.bf16.msra.mxu0 %v139_v7  ;;  %p152_p3 = por %p151_p2, %p150_p1 }
   0xa   :  { %p153_p4 = pnand %p152_p3, %p146_p0 }
   0xb   :  { %133 = vmatmul.mubr.msk.f32.vlgmr.msra.gmra.mrb[0].mxu0 %vm27_vm1, %v15_v8 }
  0xde   :  { %v97_v10 = vpop.f32.mrb[0].mxu0 }
  0xdf   :  { %v98_v11 = vadd.f32 %v117_v9, %v97_v10  ;;  %v134_v12 = vpop.f32.mrb[1].mxu0 }
  0xe1   :  { %102 = vst.msk [vmem:[#allocation2] sm:$0x3f] %vm101_vm2, %v98_v11 }
  0xe2   :  { %156 = shalt.err (!%p153_p4)
}
  0xe3   :  { %s157_s27 = scalar_lea.hbm %s226_s3, 128 }
  0xe4   :  { %p158_p5 = scmp.ne.s32.totalorder %s226_s3, %s157_s27  ;;  %p161_p6 = scmp.lt.u32.totalorder %s157_s27, %s226_s3 }
  0xe6   :  { %p163_p7 = pnand %p161_p6, %p158_p5 }
  0xe8   :  { %166 = shalt.err (!%p163_p7)
}
  0xe9   :  { %112 = dma.vmem_to_hbm [thread:$0]  %s110_s1, 128, %s226_s3, [#allocation3]  }
  0xea   :  { %167 = dma.done.wait [#allocation3], 128  }
  0xeb   :  { %168 = vsyncadd [#allocation3], 4294967168 }
  0xec   :  { %116 = vsyncpa [#allocation3], 1 }

</bundles_post_ra>
